<compile_context>
chip_gen: v5e
topology: v5e:2x2
jax: 0.10.0
libtpu: 0.0.40
codegen_flags: <defaults>
</compile_context>

<pallas_src>
import jax
import jax.numpy as jnp
from jax.experimental import pallas as pl
from jax.experimental.pallas import tpu as pltpu


D_IN, D1, D2, D3 = 288, 88, 44, 22
LANE = 128  # pad hidden feature dims to one full vreg lane width


def _round_up(n, m):
    return (n + m - 1) // m * m


def _prelu(x, alpha):
    # PyTorch PReLU: max(0, x) + alpha * min(0, x), alpha broadcast per-channel
    return jnp.where(x > 0, x, alpha * x)


def _encoder_kernel(x_ref, w1_ref, w2_ref, w3_ref, p_ref, o_ref):
    # x tile: [TILE_B, 288] f32, cast to bf16 in-kernel (free VPU filler under DMA).
    x = x_ref[...].astype(jnp.bfloat16)

    # Packed per-channel vectors: rows of the [8, 128] f32 tile.
    a1 = p_ref[0:1, :]
    b2 = p_ref[1:2, :]
    a2 = p_ref[2:3, :]
    b3 = p_ref[3:4, :]
    a3 = p_ref[4:5, :]

    # Layer 1: Linear(288 -> 88, no bias) + PReLU(88)   (cols 88..127 stay 0)
    h1 = jnp.dot(x, w1_ref[...], preferred_element_type=jnp.float32)
    h1 = _prelu(h1, a1)

    # Layer 2: Linear(88 -> 44, bias) + PReLU(44)       (cols 44..127 stay 0)
    h2 = jnp.dot(h1.astype(jnp.bfloat16), w2_ref[...],
                 preferred_element_type=jnp.float32) + b2
    h2 = _prelu(h2, a2)

    # Layer 3: Linear(44 -> 22, bias) + PReLU(22)       (cols 22..127 unused)
    h3 = jnp.dot(h2.astype(jnp.bfloat16), w3_ref[...],
                 preferred_element_type=jnp.float32) + b3
    h3 = _prelu(h3, a3)

    # Compact store: only the 22 real output lanes leave VMEM.
    o_ref[...] = h3[:, :D3].astype(o_ref.dtype)


def _pack_params(params):
    """Weights bf16, feature dims padded to 128 lanes; biases/slopes packed
    into a single [8, 128] f32 tile (rows: a1, b2, a2, b3, a3, 0, 0, 0)."""
    def pad2(a, rows, cols):
        return jnp.pad(a, ((0, rows - a.shape[0]), (0, cols - a.shape[1])))

    w1 = pad2(params["w1"].astype(jnp.bfloat16), D_IN, LANE)   # [288, 128]
    w2 = pad2(params["w2"].astype(jnp.bfloat16), LANE, LANE)   # [128, 128]
    w3 = pad2(params["w3"].astype(jnp.bfloat16), LANE, LANE)   # [128, 128]

    def row(v):
        v = jnp.asarray(v, jnp.float32).reshape(1, -1)
        return jnp.pad(v, ((0, 0), (0, LANE - v.shape[1])))

    p = jnp.concatenate(
        [row(params["a1"]), row(params["b2"]), row(params["a2"]),
         row(params["b3"]), row(params["a3"]),
         jnp.zeros((3, LANE), jnp.float32)], axis=0)               # [8, 128]
    return w1, w2, w3, p


def encoder_forward(x, params, *, tile_b=2048):
    """x: [B, 288] float32.  Returns [B, 22] float32."""
    B = x.shape[0]
    if x.dtype != jnp.float32:
        x = x.astype(jnp.float32)

    # Keep sublane (8) alignment; don't over-size the tile for tiny batches.
    tile_b = max(8, min(_round_up(tile_b, 8), _round_up(B, 8)))
    grid = (pl.cdiv(B, tile_b),)   # ragged last block is masked by Pallas

    w1, w2, w3, p = _pack_params(params)

    const = lambda i: (0, 0)  # weights / packed vectors: resident across steps

    flops = 2 * B * (D_IN * LANE + LANE * LANE + LANE * LANE)
    bytes_accessed = (x.size * 4 + B * D3 * 4
                      + (w1.size + w2.size + w3.size) * 2 + p.size * 4)

    # Rough per-step VMEM need (double-buffered x/out, f32 temps, weights).
    vmem_est = (2 * tile_b * D_IN * 4 + 2 * tile_b * D3 * 4
                + 4 * tile_b * LANE * 4
                + 2 * (w1.size + w2.size + w3.size) * 2 + 2 * p.size * 4)
    vmem_limit = int(min(110 * 1024 * 1024,
                         max(32 * 1024 * 1024, 2 * vmem_est)))

    out = pl.pallas_call(
        _encoder_kernel,
        out_shape=jax.ShapeDtypeStruct((B, D3), jnp.float32),
        grid=grid,
        in_specs=[
            pl.BlockSpec((tile_b, D_IN), lambda i: (i, 0)),  # x: streamed f32
            pl.BlockSpec((D_IN, LANE), const),               # w1 (resident)
            pl.BlockSpec((LANE, LANE), const),               # w2
            pl.BlockSpec((LANE, LANE), const),               # w3
            pl.BlockSpec((8, LANE), const),                  # packed bias/slopes
        ],
        out_specs=pl.BlockSpec((tile_b, D3), lambda i: (i, 0)),
        compiler_params=pltpu.CompilerParams(
            dimension_semantics=("parallel",),
            vmem_limit_bytes=vmem_limit),
        cost_estimate=pl.CostEstimate(
            flops=flops, transcendentals=0, bytes_accessed=bytes_accessed),
    )(x, w1, w2, w3, p)

    return out


def init_params(key):
    """Deterministic synthetic init (shapes match the PyTorch module)."""
    ks = jax.random.split(key, 5)
    # Linear weights stored as [in, out] (transposed vs. PyTorch's [out, in]).
    w1 = jax.random.normal(ks[0], (D_IN, D1), jnp.float32) * (1.0 / jnp.sqrt(D_IN))
    w2 = jax.random.normal(ks[1], (D1, D2), jnp.float32) * (1.0 / jnp.sqrt(D1))
    b2 = jax.random.normal(ks[2], (1, D2), jnp.float32) * 0.01
    w3 = jax.random.normal(ks[3], (D2, D3), jnp.float32) * (1.0 / jnp.sqrt(D2))
    b3 = jax.random.normal(ks[4], (1, D3), jnp.float32) * 0.01
    # PReLU slopes: PyTorch default init = 0.25 per channel.
    a1 = jnp.full((1, D1), 0.25, jnp.float32)
    a2 = jnp.full((1, D2), 0.25, jnp.float32)
    a3 = jnp.full((1, D3), 0.25, jnp.float32)
    return dict(w1=w1, a1=a1, w2=w2, b2=b2, a2=a2, w3=w3, b3=b3, a3=a3)


def _reference(x, p):
    # Full-precision reference (kernel uses bf16 matmul inputs + f32 accum,
    # so compare with a loosened tolerance).
    h1 = _prelu(x @ p["w1"], p["a1"])
    h2 = _prelu(h1 @ p["w2"] + p["b2"], p["a2"])
    h3 = _prelu(h2 @ p["w3"] + p["b3"], p["a3"])
    return h3


if __name__ == "__main__":
    key = jax.random.PRNGKey(0)
    kx, kp = jax.random.split(key)

    # Small test: B deliberately NOT a multiple of the tile so the ragged
    # last grid block (masked reads / dropped OOB writes) is exercised, and
    # tile_b=8 so the grid has 2 pipelined steps.
    B = 10
    x = jax.random.normal(kx, (B, D_IN), jnp.float32)
    params = init_params(kp)

    out = encoder_forward(x, params, tile_b=8)
    out = jax.block_until_ready(out)

    ref = _reference(x, params)
    assert out.shape == (B, D3), out.shape
    max_err = float(jnp.max(jnp.abs(out - ref)))
    assert jnp.allclose(out, ref, atol=3e-2, rtol=3e-2), (
        "mismatch vs reference: max abs err = %g" % max_err)

    print("KERNEL_OK")
</pallas_src>

<mosaic_0001>
module attributes {stable_mosaic.version = 11 : i64} {
  func.func @_encoder_kernel(%arg0: i32, %arg1: memref<8x288xf32, #tpu.memory_space<vmem>>, %arg2: memref<288x128xbf16, #tpu.memory_space<vmem>>, %arg3: memref<128x128xbf16, #tpu.memory_space<vmem>>, %arg4: memref<128x128xbf16, #tpu.memory_space<vmem>>, %arg5: memref<8x128xf32, #tpu.memory_space<vmem>>, %arg6: memref<8x22xf32, #tpu.memory_space<vmem>>) attributes {dimension_semantics = [#tpu.dimension_semantics<parallel>], iteration_bounds = array<i64: 2>, scalar_prefetch = 0 : i64, scratch_operands = 0 : i64, tpu.core_type = #tpu.core_type<tc>, window_params = [{transform_indices = @transform_0, window_bounds = array<i64: 8, 288>}, {pipeline_mode = #tpu.pipeline_mode<synchronous>, transform_indices = @transform_1, window_bounds = array<i64: 288, 128>}, {pipeline_mode = #tpu.pipeline_mode<synchronous>, transform_indices = @transform_2, window_bounds = array<i64: 128, 128>}, {pipeline_mode = #tpu.pipeline_mode<synchronous>, transform_indices = @transform_3, window_bounds = array<i64: 128, 128>}, {pipeline_mode = #tpu.pipeline_mode<synchronous>, transform_indices = @transform_4, window_bounds = array<i64: 8, 128>}, {transform_indices = @transform_5, window_bounds = array<i64: 8, 22>}]} {
    %c0 = arith.constant 0 : index
    %c0_0 = arith.constant 0 : index
    %0 = vector.load %arg1[%c0, %c0_0] : memref<8x288xf32, #tpu.memory_space<vmem>>, vector<8x288xf32>
    %1 = arith.truncf %0 : vector<8x288xf32> to vector<8x288xbf16>
    %c0_1 = arith.constant 0 : index
    %c0_2 = arith.constant 0 : index
    %2 = vector.load %arg5[%c0_1, %c0_2] : memref<8x128xf32, #tpu.memory_space<vmem>>, vector<1x128xf32>
    %c1 = arith.constant 1 : index
    %c0_3 = arith.constant 0 : index
    %3 = vector.load %arg5[%c1, %c0_3] : memref<8x128xf32, #tpu.memory_space<vmem>>, vector<1x128xf32>
    %c2 = arith.constant 2 : index
    %c0_4 = arith.constant 0 : index
    %4 = vector.load %arg5[%c2, %c0_4] : memref<8x128xf32, #tpu.memory_space<vmem>>, vector<1x128xf32>
    %c3 = arith.constant 3 : index
    %c0_5 = arith.constant 0 : index
    %5 = vector.load %arg5[%c3, %c0_5] : memref<8x128xf32, #tpu.memory_space<vmem>>, vector<1x128xf32>
    %c4 = arith.constant 4 : index
    %c0_6 = arith.constant 0 : index
    %6 = vector.load %arg5[%c4, %c0_6] : memref<8x128xf32, #tpu.memory_space<vmem>>, vector<1x128xf32>
    %c0_7 = arith.constant 0 : index
    %c0_8 = arith.constant 0 : index
    %7 = vector.load %arg2[%c0_7, %c0_8] : memref<288x128xbf16, #tpu.memory_space<vmem>>, vector<288x128xbf16>
    %cst = arith.constant dense<0.000000e+00> : vector<8x128xf32>
    %8 = tpu.matmul %1, %7, %cst {dimension_numbers = #tpu.dot_dimension_numbers<[1], [0], [0], [1], [0, 0, 1, 1], [], []>} : vector<8x288xbf16>, vector<288x128xbf16>, vector<8x128xf32> -> vector<8x128xf32>
    %cst_9 = arith.constant 0.000000e+00 : f32
    %9 = vector.broadcast %cst_9 : f32 to vector<8x128xf32>
    %10 = arith.cmpf ogt, %8, %9 : vector<8x128xf32>
    %11 = vector.broadcast %2 : vector<1x128xf32> to vector<8x128xf32>
    %12 = arith.mulf %11, %8 : vector<8x128xf32>
    %13 = arith.select %10, %8, %12 : vector<8x128xi1>, vector<8x128xf32>
    %14 = arith.truncf %13 : vector<8x128xf32> to vector<8x128xbf16>
    %c0_10 = arith.constant 0 : index
    %c0_11 = arith.constant 0 : index
    %15 = vector.load %arg3[%c0_10, %c0_11] : memref<128x128xbf16, #tpu.memory_space<vmem>>, vector<128x128xbf16>
    %cst_12 = arith.constant dense<0.000000e+00> : vector<8x128xf32>
    %16 = tpu.matmul %14, %15, %cst_12 {dimension_numbers = #tpu.dot_dimension_numbers<[1], [0], [0], [1], [0, 0, 1, 1], [], []>} : vector<8x128xbf16>, vector<128x128xbf16>, vector<8x128xf32> -> vector<8x128xf32>
    %17 = vector.broadcast %3 : vector<1x128xf32> to vector<8x128xf32>
    %18 = arith.addf %16, %17 : vector<8x128xf32>
    %cst_13 = arith.constant 0.000000e+00 : f32
    %19 = vector.broadcast %cst_13 : f32 to vector<8x128xf32>
    %20 = arith.cmpf ogt, %18, %19 : vector<8x128xf32>
    %21 = vector.broadcast %4 : vector<1x128xf32> to vector<8x128xf32>
    %22 = arith.mulf %21, %18 : vector<8x128xf32>
    %23 = arith.select %20, %18, %22 : vector<8x128xi1>, vector<8x128xf32>
    %24 = arith.truncf %23 : vector<8x128xf32> to vector<8x128xbf16>
    %c0_14 = arith.constant 0 : index
    %c0_15 = arith.constant 0 : index
    %25 = vector.load %arg4[%c0_14, %c0_15] : memref<128x128xbf16, #tpu.memory_space<vmem>>, vector<128x128xbf16>
    %cst_16 = arith.constant dense<0.000000e+00> : vector<8x128xf32>
    %26 = tpu.matmul %24, %25, %cst_16 {dimension_numbers = #tpu.dot_dimension_numbers<[1], [0], [0], [1], [0, 0, 1, 1], [], []>} : vector<8x128xbf16>, vector<128x128xbf16>, vector<8x128xf32> -> vector<8x128xf32>
    %27 = vector.broadcast %5 : vector<1x128xf32> to vector<8x128xf32>
    %28 = arith.addf %26, %27 : vector<8x128xf32>
    %cst_17 = arith.constant 0.000000e+00 : f32
    %29 = vector.broadcast %cst_17 : f32 to vector<8x128xf32>
    %30 = arith.cmpf ogt, %28, %29 : vector<8x128xf32>
    %31 = vector.broadcast %6 : vector<1x128xf32> to vector<8x128xf32>
    %32 = arith.mulf %31, %28 : vector<8x128xf32>
    %33 = arith.select %30, %28, %32 : vector<8x128xi1>, vector<8x128xf32>
    %34 = vector.extract_strided_slice %33 {offsets = [0, 0], sizes = [8, 22], strides = [1, 1]} : vector<8x128xf32> to vector<8x22xf32>
    %c0_18 = arith.constant 0 : index
    %c0_19 = arith.constant 0 : index
    %35 = vector.load %arg6[%c0_18, %c0_19] : memref<8x22xf32, #tpu.memory_space<vmem>>, vector<8x22xf32>
    tpu.vector_store %arg6[%c0_18, %c0_19], %34 {strides = array<i32>} : memref<8x22xf32, #tpu.memory_space<vmem>>, vector<8x22xf32>,
    return
  }
  func.func @transform_0(%arg0: i32) -> (i32, i32) {
    %c0_i32 = arith.constant 0 : i32
    %c0_i32_0 = arith.constant 0 : i32
    return %arg0, %c0_i32 : i32, i32
  }
  func.func @transform_1(%arg0: i32) -> (i32, i32) {
    %c0_i32 = arith.constant 0 : i32
    %c0_i32_0 = arith.constant 0 : i32
    %c0_i32_1 = arith.constant 0 : i32
    return %c0_i32, %c0_i32_0 : i32, i32
  }
  func.func @transform_2(%arg0: i32) -> (i32, i32) {
    %c0_i32 = arith.constant 0 : i32
    %c0_i32_0 = arith.constant 0 : i32
    %c0_i32_1 = arith.constant 0 : i32
    return %c0_i32, %c0_i32_0 : i32, i32
  }
  func.func @transform_3(%arg0: i32) -> (i32, i32) {
    %c0_i32 = arith.constant 0 : i32
    %c0_i32_0 = arith.constant 0 : i32
    %c0_i32_1 = arith.constant 0 : i32
    return %c0_i32, %c0_i32_0 : i32, i32
  }
  func.func @transform_4(%arg0: i32) -> (i32, i32) {
    %c0_i32 = arith.constant 0 : i32
    %c0_i32_0 = arith.constant 0 : i32
    %c0_i32_1 = arith.constant 0 : i32
    return %c0_i32, %c0_i32_0 : i32, i32
  }
  func.func @transform_5(%arg0: i32) -> (i32, i32) {
    %c0_i32 = arith.constant 0 : i32
    %c0_i32_0 = arith.constant 0 : i32
    return %arg0, %c0_i32 : i32, i32
  }
}

</mosaic_0001>

<bundles_post_ra>
// kernel: tpu_custom_call.1
= control target key start
LH: loop header
LB: loop body
LE: loop exit
PB: predicated region body
PF: predicated region fallthrough
CT: control target
= control target key end

     0   :  { %s1517_s0 = inlined_call_operand.hbm [shape: f32[10,288], index: 0, kind: input, shape index: {}]   ;;  %s1518_s1 = inlined_call_operand.hbm [shape: bf16[288,128], index: 1, kind: input, shape index: {}]   ;;  %s1519_s2 = inlined_call_operand.hbm [shape: bf16[128,128], index: 2, kind: input, shape index: {}]   ;;  %s1520_s3 = inlined_call_operand.hbm [shape: bf16[128,128], index: 3, kind: input, shape index: {}]   ;;  %s1521_s4 = inlined_call_operand.hbm [shape: f32[8,128], index: 4, kind: input, shape index: {}]   ;;  %s1522_s5 = inlined_call_operand.hbm [shape: f32[10,22], index: 5, kind: output, shape index: {}]  }
   0x1   :  { %1523 = sst [smem:[#allocation16_spill]] %s1518_s1 }
   0x2   :  { %10 = vsyncpa [#allocation3], 0 }
   0x3   :  { %12 = vsyncpa [#allocation3 + $0x1], 0 }
   0x4   :  { %13 = vsyncpa [#allocation6], 0 }
   0x5   :  { %14 = vsyncpa [#allocation9], 0 }
   0x6   :  { %15 = vsyncpa [#allocation4], 0 }
   0x7   :  { %17 = vsyncpa [#allocation4 + $0x1], 0  ;;  %s1350_s18 = smov 0   ;;  %s1352_s19 = smov 0  }
   0x8   :  { %s1354_s20 = smov 0   ;;  %s1356_s21 = smov 0  }
   0x9 LB: > { %s1524_s1 = sld [smem:[#allocation16_spill]]  ;;  %s1374_s25 = sadd.s32 4294967295, %s1312_s21   ;;  %s1312_s21 = sphi %s1356_s21, %s1535_s21   ;;  %s1308_s20 = sphi %s1354_s20, %s1534_s20   ;;  %s1304_s19 = sphi %s1352_s19, %s1533_s19   ;;  %s1300_s18 = sphi %s1350_s18, %s1532_s18  }
   0xa   : > { %p803_p0 = scmp.ge.s32.totalorder %s1312_s21, 1  ;;  %p44_p1 = scmp.eq.s32.totalorder %s1374_s25, 0 }
   0xb   : > { %p164_p2 = scmp.lt.s32.totalorder %s1312_s21, 3  ;;  %s1314_s27 = smov [#allocation5]  }
   0xc   : > { %s177_s28 = sshll.u32 %s1314_s27, 4  ;;  %s203_s6 = sshll.u32 %s1520_s3, 4  ;;  %s178_s28 = int_to_ptr.vmem [resolvable:$true] %s177_s28  ;;  %s204_s6 = int_to_ptr.hbm [resolvable:$true] %s203_s6 }
   0xd   : > { %p1379_p3 = pnand %p803_p0, %p164_p2  ;;  %s189_s10 = sshll.u32 %s1519_s2, 4  ;;  %s190_s10 = int_to_ptr.hbm [resolvable:$true] %s189_s10 }
   0xe   : > { %s1315_s11 = smov [#allocation8]   ;;  %s1316_s13 = smov 64  }
   0xf   : > { %s175_s24 = sshll.u32 %s1524_s1, 4  ;;  %p1014_p4 = pneg %p1379_p3  ;;  %s176_s24 = int_to_ptr.hbm [resolvable:$true] %s175_s24 }
  0x10   : > { %s205_s12 = sshll.u32 %s1315_s11, 4  ;;  %s1317_s14 = smov 4   ;;  %s206_s12 = int_to_ptr.vmem [resolvable:$true] %s205_s12 }
  0x11   : > { %p1391_p6 = pnand %p1014_p4, %p44_p1  ;;  %s218_s17 = sshll.u32 %s1521_s4, 4  ;;  %s219_s17 = int_to_ptr.hbm [resolvable:$true] %s218_s17 }
  0x12   : > { %s1318_s22 = smov [#allocation7]   ;;  %s1411_s29 = sadd.s32 1, %s1312_s21  }
  0x13   : > { %1017 = dma.hbm_to_vmem [thread:$0]  (!%p1391_p6), %s176_s24, 2304, %s178_s28, [#allocation6], %s1316_s13, %s1316_s13, %s1317_s14  }
  0x14   : > { %1023 = dma.hbm_to_vmem [thread:$0]  (!%p1391_p6), %s204_s6, 1024, %s206_s12, [#allocation9], %s1316_s13, %s1316_s13, %s1317_s14  }
  0x15   : > { %s191_s23 = sshll.u32 %s1318_s22, 4  ;;  %s1319_s24 = smov [#allocation10]   ;;  %s192_s23 = int_to_ptr.vmem [resolvable:$true] %s191_s23 }
  0x16   : > { %1020 = dma.hbm_to_vmem [thread:$0]  (!%p1391_p6), %s190_s10, 1024, %s192_s23, [#allocation6], %s1316_s13, %s1316_s13, %s1317_s14  }
  0x17   : > { %s220_s27 = sshll.u32 %s1319_s24, 4  ;;  %s802_s28 = sadd.s32 4294967294, %s1312_s21   ;;  %s221_s27 = int_to_ptr.vmem [resolvable:$true] %s220_s27 }
  0x18   : > { %1026 = dma.hbm_to_vmem [thread:$0]  (!%p1391_p6), %s219_s17, 128, %s221_s27, [#allocation9]  }
  0x19   : > { %s27_s30 = ssub.s32 %s1312_s21, %s1411_s29  ;;  %s30_s6 = sadd.s32 1, %s1308_s20 }
  0x1a   : > { %p28_p7 = scmp.eq.s32.totalorder %s27_s30, 0  ;;  %p37_p8 = scmp.ne.s32.totalorder %s1308_s20, %s1304_s19 }
  0x1b   : > { %p38_p9 = scmp.eq.s32.totalorder %s1312_s21, 0  ;;  %p43_p10 = scmp.ne.s32.totalorder %s1304_s19, %s1300_s18 }
  0x1c   : > { %s1422_s8 = scalar_select %p28_p7, %s1308_s20, %s30_s6  }
  0x1d   : > { %p39_p11 = por %p38_p9, %p37_p8  ;;  %p1426_p12 = por %p44_p1, %p43_p10 }
  0x1e   : > { %p151_p13 = scmp.eq.s32.totalorder %s1374_s25, 1  ;;  %p157_p0 = scmp.eq.s32.totalorder %s802_s28, 1 }
  0x1f   : > { %p1039_p2 = scmp.lt.s32.totalorder %s1312_s21, 2  ;;  %s231_s7 = sand.u32 1, %s1308_s20  }
  0x20   : > { %p1433_p4 = por %p151_p13, %p37_p8  ;;  %p1437_p6 = por %p157_p0, %p43_p10 }
  0x21   : > { %s991_s12 = smul.u32 24, %s231_s7  ;;  %p1442_p7 = pnand %p1039_p2, %p39_p11 }
  0x22   : > { %s992_s13 = smul.u32 24, %s1312_s21  ;;  %s232_s27 = scalar_lea.sflag [#allocation3], %s231_s7 }
  0x23   : > { %s235_s22 = scalar_lea.vmem [#allocation2], %s991_s12  ;;  %p1212_p9 = pneg %p1442_p7 }
  0x24   : > { %s240_s17 = scalar_lea.hbm %s1517_s0, %s992_s13  ;;  %s244_s23 = sshll.u32 %s235_s22, 4  ;;  %s245_s23 = int_to_ptr.vmem [resolvable:$true] %s244_s23 }
  0x25   : > { %s242_s24 = sshll.u32 %s240_s17, 4  ;;  %s1215_s15 = scalar_lea.hbm %s1517_s0, 48  ;;  %s243_s24 = int_to_ptr.hbm [resolvable:$true] %s242_s24 }
  0x26   : > { %s1208_s28 = sshra.s32 %s243_s24, 4  ;;  %s1209_s28 = int_to_ptr.hbm [resolvable:$true] %s1208_s28 }
  0x27   : > { %s1210_s30 = scalar_lea.hbm %s1209_s28, 24  ;;  %p1216_p13 = scmp.lt.s32.totalorder %s1209_s28, %s1517_s0 }
  0x28   : > { %p1211_p8 = scmp.ne.s32.totalorder %s1209_s28, %s1210_s30  ;;  %p1217_p0 = scmp.lt.s32.totalorder %s1215_s15, %s1210_s30 }
  0x2a   : > { %p1213_p10 = pnand %p1212_p9, %p1211_p8  ;;  %p1218_p2 = por %p1217_p0, %p1216_p13 }
  0x2c   : > { %p1214_p11 = pneg %p1213_p10 }
  0x2e   : > { %p1219_p5 = pnand %p1218_p2, %p1214_p11 }
  0x30   : > { %1222 = shalt.err (!%p1219_p5)
}
  0x31   : > { %1030 = dma.hbm_to_vmem [thread:$0]  (!%p1442_p7), %s243_s24, 384, %s245_s23, %s232_s27  }
  0x32   : > { %253 = sbr.rel (%p1379_p3) target bundleno = 507 (0x1fb), region = 40  ;;  %s1462_s7 = sand.u32 (!%p1379_p3), 1, %s1304_s19  }
  0x33   : > { %s993_s1 = smul.u32 (!%p1379_p3), 24, %s1462_s7  ;;  %s256_s12 = scalar_lea.sflag (!%p1379_p3), [#allocation3], %s1462_s7 }
  0x35   : > { %s1466_s17 = scalar_lea.vmem (!%p1379_p3), [#allocation2], %s993_s1 }
  0x37   : > { %1283 = dma.done.wait (%p1426_p12), %s256_s12, 384  }
  0x38   : > { %1285 = vsyncadd (%p1426_p12), %s256_s12, 4294966912 }
  0x39   : > { %1287 = dma.done.wait (%p44_p1), [#allocation6], 3328  }
  0x3a   : > { %1289 = vsyncadd (%p44_p1), [#allocation6], 4294963968 }
  0x3b   : > { %1291 = dma.done.wait (%p44_p1), [#allocation9], 1152  }
  0x3c   : > { %1293 = vsyncadd (%p44_p1), [#allocation9], 4294966144  ;;  %v964_v0 = vld [vmem:[#allocation5 + $0x38] sm:$0xff]  ;;  %v963_v2 = vld [vmem:[#allocation5 + $0x30] sm:$0xff]  ;;  %vm463_vm0 = vcmask 261120   ;;  %s815_s26 = sshll.u32 %s1462_s7, 3 }
  0x3d   : > { %v972_v1 = vld [vmem:[#allocation5 + $0x78] sm:$0xff]  ;;  %467 = vmatpush.bf16.msra.mxu0 %v964_v0  ;;  %v971_v3 = vld [vmem:[#allocation5 + $0x70] sm:$0xff]  ;;  %v974_v4 = vld [vmem:[#allocation5 + $0x88] sm:$0xff]  ;;  %s954_s9 = sshll.u32 %s1374_s25, 3  ;;  %s306_s24 = scalar_lea.vmem [#allocation11], %s815_s26  ;;  %vm676_vm4 = vcmask 179200  }
  0x3e   : > { %480 = vmatpush.bf16.msra.mxu1 %v972_v1  ;;  %499 = vmatpush.bf16.msra.mxu2 %v974_v4  ;;  %v973_v5 = vld [vmem:[#allocation5 + $0x80] sm:$0xff]  ;;  %v962_v7 = vld [vmem:[#allocation5 + $0x28] sm:$0xff]  ;;  %v980_v14 = vld [vmem:[#allocation7 + $0x28] sm:$0xff]  ;;  %s689_s23 = scalar_lea.hbm %s1522_s5, %s954_s9  ;;  %s691_s27 = sshll.u32 %s306_s24, 4  ;;  %s692_s27 = int_to_ptr.vmem [resolvable:$true] %s691_s27 }
  0x3f   : > { %v310_v6 = vld [vmem:[%s1466_s17 + $0x10] sm:$0xff]  ;;  %v970_v8 = vld [vmem:[#allocation5 + $0x68] sm:$0xff]  ;;  %v979_v17 = vld [vmem:[#allocation7 + $0x20] sm:$0xff]  ;;  %s693_s28 = sshll.u32 %s689_s23, 4  ;;  %s679_s25 = scalar_lea.sflag [#allocation4], %s1462_s7  ;;  %s694_s28 = int_to_ptr.hbm [resolvable:$true] %s693_s28 }
  0x40   : > { %v313_v9 = vpack.c.bf16 %v310_v6, %v310_v6  ;;  %v982_v10 = vld [vmem:[#allocation7 + $0x38] sm:$0xff]  ;;  %v981_v11 = vld [vmem:[#allocation7 + $0x30] sm:$0xff]  ;;  %v960_v15 = vld [vmem:[#allocation5 + $0x18] sm:$0xff]  ;;  %s1252_s30 = sshra.s32 %s694_s28, 4  ;;  %s1258_s13 = scalar_lea.hbm %s1522_s5, 16  ;;  %s1253_s30 = int_to_ptr.hbm [resolvable:$true] %s1252_s30 }
  0x41   : > { %468 = vmatpush.bf16.msra.mxu0 %v963_v2  ;;  %576 = vmatpush.bf16.msra.mxu3 %v982_v10  ;;  %v961_v12 = vld [vmem:[#allocation5 + $0x20] sm:$0xff]  ;;  %v968_v16 = vld [vmem:[#allocation5 + $0x58] sm:$0xff]  ;;  %v959_v18 = vld [vmem:[#allocation5 + $0x10] sm:$0xff]  ;;  %s1254_s6 = scalar_lea.hbm %s1253_s30, 8  ;;  %p1259_p12 = scmp.lt.s32.totalorder %s1253_s30, %s1522_s5 }
  0x42   : > { %481 = vmatpush.bf16.msra.mxu1 %v971_v3  ;;  %500 = vmatpush.bf16.msra.mxu2 %v973_v5  ;;  %v969_v13 = vld [vmem:[#allocation5 + $0x60] sm:$0xff]  ;;  %v967_v19 = vld [vmem:[#allocation5 + $0x50] sm:$0xff]  ;;  %v958_v20 = vld [vmem:[#allocation5 + $0x8] sm:$0xff]  ;;  %p1255_p1 = scmp.ne.s32.totalorder %s1253_s30, %s1254_s6  ;;  %p1260_p7 = scmp.lt.s32.totalorder %s1258_s13, %s1254_s6 }
  0x43   : > { %v966_v21 = vld [vmem:[#allocation5 + $0x48] sm:$0xff]  ;;  %v957_v22 = vld [vmem:[#allocation5] sm:$0xff]  ;;  %v309_v25 = vld [vmem:[%s1466_s17 + $0x8] sm:$0xff] }
  0x44   : > { %v965_v23 = vld [vmem:[#allocation5 + $0x40] sm:$0xff]  ;;  %v308_v24 = vld [vmem:[%s1466_s17] sm:$0xff]  ;;  %v312_v27 = vpack.c.bf16 %v309_v25, %v309_v25  ;;  %v976_v30 = vld [vmem:[#allocation7 + $0x8] sm:$0xff]  ;;  %p1256_p3 = pnand %p1255_p1, %p1433_p4  ;;  %p1261_p8 = por %p1260_p7, %p1259_p12 }
  0x45   : > { %469 = vmatpush.bf16.msra.mxu0 %v962_v7  ;;  %888 = vmatmul.msk.bf16.vlgmr.msra.gmra.mxu2 %vm463_vm0, %v313_v9  ;;  %v311_v26 = vpack.c.bf16 %v308_v24, %v308_v24  ;;  %v978_v28 = vld [vmem:[#allocation7 + $0x18] sm:$0xff]  ;;  %v977_v29 = vld [vmem:[#allocation7 + $0x10] sm:$0xff]  ;;  %v975_v31 = vld [vmem:[#allocation7] sm:$0xff] }
  0x46   : > { %482 = vmatpush.bf16.msra.mxu1 %v970_v8  ;;  %577 = vmatpush.bf16.msra.mxu3 %v981_v11  ;;  %v990_v32 = vld [vmem:[#allocation8 + $0x38] sm:$0xff]  ;;  %v989_v33 = vld [vmem:[#allocation8 + $0x30] sm:$0xff]  ;;  %v988_v35 = vld [vmem:[#allocation8 + $0x28] sm:$0xff]  ;;  %p1257_p5 = pneg %p1256_p3 }
  0x47   : > { %659 = vmatpush.bf16.msrb.mxu2 %v990_v32  ;;  %v987_v36 = vld [vmem:[#allocation8 + $0x20] sm:$0xff]  ;;  %v986_v38 = vld [vmem:[#allocation8 + $0x18] sm:$0xff]  ;;  %v985_v39 = vld [vmem:[#allocation8 + $0x10] sm:$0xff] }
  0x48   : > { %v1083_v43 = vld [vmem:[#allocation10] ss:$0 sm:$0xff]  ;;  %v984_v50 = vld [vmem:[#allocation8 + $0x8] sm:$0xff]  ;;  %v1084_v52 = vld [vmem:[#allocation10 + $0x1] ss:$0 sm:$0xff]  ;;  %p1262_p9 = pnand %p1261_p8, %p1257_p5 }
  0x49   : > { %470 = vmatpush.bf16.msra.mxu0 %v961_v12  ;;  %v983_v51 = vld [vmem:[#allocation8] sm:$0xff] }
  0x4a   : > { %483 = vmatpush.bf16.msra.mxu1 %v969_v13  ;;  %578 = vmatpush.bf16.msra.mxu3 %v980_v14  ;;  %v1085_v53 = vld [vmem:[#allocation10 + $0x2] ss:$0 sm:$0xff]  ;;  %v1086_v60 = vld [vmem:[#allocation10 + $0x3] ss:$0 sm:$0xff]  ;;  %v1087_v61 = vld [vmem:[#allocation10 + $0x4] ss:$0 sm:$0xff] }
  0x4b   : > { %660 = vmatpush.bf16.msrb.mxu2 %v989_v33 }
  0x4d   : > { %471 = vmatpush.bf16.msra.mxu0 %v960_v15 }
  0x4e   : > { %484 = vmatpush.bf16.msra.mxu1 %v968_v16  ;;  %579 = vmatpush.bf16.msra.mxu3 %v979_v17 }
  0x4f   : > { %661 = vmatpush.bf16.msrb.mxu2 %v988_v35 }
  0x51   : > { %472 = vmatpush.bf16.msra.mxu0 %v959_v18 }
  0x52   : > { %485 = vmatpush.bf16.msra.mxu1 %v967_v19  ;;  %580 = vmatpush.bf16.msra.mxu3 %v978_v28 }
  0x53   : > { %662 = vmatpush.bf16.msrb.mxu2 %v987_v36 }
  0x55   : > { %473 = vmatpush.bf16.msra.mxu0 %v958_v20 }
  0x56   : > { %486 = vmatpush.bf16.msra.mxu1 %v966_v21  ;;  %581 = vmatpush.bf16.msra.mxu3 %v977_v29 }
  0x57   : > { %663 = vmatpush.bf16.msrb.mxu2 %v986_v38 }
  0x59   : > { %474 = vmatpush.bf16.msra.mxu0 %v957_v22 }
  0x5a   : > { %487 = vmatpush.bf16.msra.mxu1 %v965_v23  ;;  %582 = vmatpush.bf16.msra.mxu3 %v976_v30 }
  0x5b   : > { %664 = vmatpush.bf16.msrb.mxu2 %v985_v39 }
  0x5c   : > { %475 = vmatmul.bf16.vlgmr.msra.gmra.mxu0 %v311_v26 }
  0x5d   : > { %488 = vmatmul.bf16.vlgmr.msra.gmra.mxu1 %v312_v27 }
  0x5e   : > { %583 = vmatpush.bf16.msra.mxu3 %v975_v31 }
  0x5f   : > { %665 = vmatpush.bf16.msrb.mxu2 %v984_v50 }
  0x63   : > { %666 = vmatpush.bf16.msrb.mxu2 %v983_v51 }
  0xc8   : > { %v502_v34 = vpop.f32.mrf.mxu2 }
  0xd0   : > { %v504_v37 = vpop.f32.mrf.mxu2 }
  0xd9   : > { %v476_v40 = vpop.f32.mrf.mxu0 }
  0xda   : > { %v489_v41 = vpop.f32.mrf.mxu1 }
  0xdb   : > { %v490_v42 = vadd.f32 %v489_v41, %v476_v40 }
  0xdd   : > { %v503_v44 = vadd.f32 %v502_v34, %v490_v42 }
  0xdf   : > { %vm506_vm1 = vcmp.gt.f32.partialorder %v503_v44, 0.0  ;;  %v508_v45 = vmul.f32 %v1083_v43, %v503_v44 }
  0xe1   : > { %v509_v46 = vsel %vm506_vm1, %v503_v44, %v508_v45  ;;  %v478_v47 = vpop.f32.mrf.mxu0 }
  0xe2   : > { %v491_v48 = vpop.f32.mrf.mxu1  ;;  %v510_v49 = vpack.c.bf16 %v509_v46, %v509_v46 }
  0xe4   : > { %584 = vmatmul.bf16.vlgmr.msra.gmra.mxu3 %v510_v49 }
 0x167   : > { %v585_v54 = vpop.f32.mrf.mxu3 }
 0x168   : > { %v586_v55 = vadd.f32 %v1084_v52, %v585_v54 }
 0x16a   : > { %vm589_vm2 = vcmp.gt.f32.partialorder %v586_v55, 0.0  ;;  %v591_v56 = vmul.f32 %v1085_v53, %v586_v55 }
 0x16c   : > { %v592_v57 = vsel %vm589_vm2, %v586_v55, %v591_v56 }
 0x16d   : > { %v593_v58 = vpack.c.bf16 %v592_v57, %v592_v57 }
 0x16f   : > { %v587_v59 = vpop.f32.mrf.mxu3  ;;  %667 = vmatmul.bf16.vlgmr.msrb.gmra.mxu2 %v593_v58 }
 0x1f2   : > { %v668_v62 = vpop.f32.mrf.mxu2 }
 0x1f3   : > { %v669_v63 = vadd.f32 %v1086_v60, %v668_v62 }
 0x1f5   : > { %vm672_vm3 = vcmp.gt.f32.partialorder %v669_v63, 0.0  ;;  %v674_v0 = vmul.f32 %v1087_v61, %v669_v63 }
 0x1f7   : > { %v675_v1 = vsel %vm672_vm3, %v669_v63, %v674_v0 }
 0x1f8   : > { %677 = vst.msk [vmem:[%s306_s24] sm:$0xff] %vm676_vm4, %v675_v1 }
 0x1f9   : > { %1265 = shalt.err (!%p1262_p9)
}
 0x1fa   : > { %1012 = dma.vmem_to_hbm [thread:$0]  (%p1433_p4), %s692_s27, 128, %s694_s28, %s679_s25   ;;  %v670_v2 = vpop.f32.mrf.mxu2 }
 0x1fb PF: > { %s705_s7 = sand.u32 1, %s1300_s18   ;;  %p1531_p10 = scmp.ge.s32.totalorder %s1312_s21, 2 }
 0x1fc   : > { %s706_s17 = scalar_lea.sflag [#allocation4], %s705_s7 }
 0x1fd   : > { %p1032_p11 = pnand %p1531_p10, %p1437_p6 }
 0x1ff   : > { %p1033_p13 = pneg %p1032_p11 }
 0x201   : > { %1295 = dma.done.wait (%p1033_p13), %s706_s17, 128  }
 0x202   : > { %1297 = vsyncadd (%p1033_p13), %s706_s17, 4294967168  ;;  %p20_p0 = scmp.ge.s32.totalorder %s1411_s29, 4   ;;  %s1532_s18 = smov %s1304_s19 }
 0x203   : > { %s1533_s19 = smov %s1308_s20  ;;  %s1534_s20 = smov %s1422_s8 }
 0x204   : > { %s1535_s21 = smov %s1411_s29  ;;  %22 = sbr.rel (!%p20_p0) target bundleno = 9 (0x9), region = 101 }
 0x209   :  { %712 = vsyncpa [#allocation3], 1 }
 0x20a   :  { %714 = vsyncpa [#allocation3 + $0x1], 1 }
 0x20b   :  { %715 = vsyncpa [#allocation6], 1 }
 0x20c   :  { %716 = vsyncpa [#allocation9], 1 }
 0x20d   :  { %717 = vsyncpa [#allocation4], 1 }
 0x20e   :  { %719 = vsyncpa [#allocation4 + $0x1], 1 }

</bundles_post_ra>
